<compile_context>
chip_gen: v5e
topology: v5e:2x2
jax: 0.10.0
libtpu: 0.0.40
codegen_flags: <defaults>
</compile_context>

<pallas_src>
import jax
import jax.numpy as jnp
from jax.experimental import pallas as pl
from jax.experimental.pallas import tpu as pltpu


def _round_up(a: int, m: int) -> int:
    return ((a + m - 1) // m) * m


# ----------------------------------------------------------------------------
# Kernel 1: GNN dense part, transposed layout (H on sublanes, nodes on lanes)
# so the (H, TN) output store is lane-dense.  Sparse aggregation happens in
# glue; this kernel is just two small matmuls + bias + tanh per node tile.
# ----------------------------------------------------------------------------
def gnn_kernel(xt_ref, aggt_ref, wst_ref, wnt_ref, bt_ref, out_ref):
    h = (jnp.dot(wst_ref[...], xt_ref[...], preferred_element_type=jnp.float32)
         + jnp.dot(wnt_ref[...], aggt_ref[...], preferred_element_type=jnp.float32)
         + bt_ref[...])                                    # (H, TN)
    out_ref[...] = jnp.tanh(h)


def run_gnn(xt, aggt, wst, wnt, bt, *, tile_n):
    d_in, n_pad = xt.shape
    h = wst.shape[0]
    return pl.pallas_call(
        gnn_kernel,
        out_shape=jax.ShapeDtypeStruct((h, n_pad), jnp.float32),
        grid_spec=pltpu.PrefetchScalarGridSpec(
            num_scalar_prefetch=0,
            grid=(n_pad // tile_n,),
            in_specs=[
                pl.BlockSpec((d_in, tile_n), lambda i: (0, i)),   # x^T tile
                pl.BlockSpec((d_in, tile_n), lambda i: (0, i)),   # agg^T tile
                pl.BlockSpec((h, d_in), lambda i: (0, 0)),        # W_self^T
                pl.BlockSpec((h, d_in), lambda i: (0, 0)),        # W_nbr^T
                pl.BlockSpec((h, 1), lambda i: (0, 0)),           # b^T
            ],
            out_specs=pl.BlockSpec((h, tile_n), lambda i: (0, i)),
        ),
        compiler_params=pltpu.CompilerParams(
            dimension_semantics=("parallel",)),
    )(xt, aggt, wst, wnt, bt)


# ----------------------------------------------------------------------------
# Kernel 2: per-edge causal features + phi MLP + edge predictor, tiled over
# edges.  x_emb^T is resident in VMEM across all edge tiles; the endpoint
# gather is done in-kernel with a one-hot matmul on the MXU.
# ----------------------------------------------------------------------------
def edge_kernel(xembt_ref, src_ref, dst_ref,
                w1t_ref, b1t_ref, w2_ref, b2_ref,
                we1t_ref, be1t_ref, we2_ref, be2_ref,
                out_ref):
    xembt = xembt_ref[...]                       # (H, N_pad), resident
    n_pad = xembt.shape[1]
    te = src_ref.shape[1]

    # Fused gather: one-hot(node index) @ embeddings^T.  Exact (single nonzero
    # per column) and keeps the (E, H) gathered arrays out of HBM entirely.
    # TODO(synk): for very large node counts switch to a DMA-based row gather,
    # the one-hot intermediate is O(N_pad * TE) per tile.
    node_iota = jax.lax.broadcasted_iota(jnp.int32, (n_pad, te), 0)
    oh_src = (node_iota == src_ref[...]).astype(jnp.float32)        # (N_pad, TE)
    oh_dst = (node_iota == dst_ref[...]).astype(jnp.float32)
    ei = jnp.dot(xembt, oh_src, preferred_element_type=jnp.float32)  # (H, TE)
    ej = jnp.dot(xembt, oh_dst, preferred_element_type=jnp.float32)  # (H, TE)

    delta = ej - ei                              # (H, TE), edges on lanes
    dt = delta[0:1, :]                           # (1, TE) full-lane rows
    dx = delta[1:2, :]
    dy = delta[2:3, :]
    dx2 = dx * dx + dy * dy
    dt2 = dt * dt

    # phi MLP on the source embedding: relu(W1^T ei + b1), then the
    # (d_phi -> 1) contraction as VPU multiply + sublane reduce (no N=1 MXU).
    hphi = jnp.maximum(
        jnp.dot(w1t_ref[...], ei, preferred_element_type=jnp.float32)
        + b1t_ref[...], 0.0)                     # (Dphi, TE)
    phi = (jnp.sum(w2_ref[...] * hphi, axis=0, keepdims=True)
           + b2_ref[...])                        # (1, TE)

    ds2 = -phi * dt2 + dx2
    spatial_dist = jnp.sqrt(dx2)
    is_timelike = (ds2 < 0.0).astype(jnp.float32)

    # Edge-predictor layer 1: the K=6 contraction unrolled on the VPU — no
    # 6-way feature concatenate and no degenerate K=6 MXU matmul.
    we1t = we1t_ref[...]                         # (Dep, 6)
    he = (we1t[:, 0:1] * dx
          + we1t[:, 1:2] * dy
          + we1t[:, 2:3] * dt
          + we1t[:, 3:4] * ds2
          + we1t[:, 4:5] * spatial_dist
          + we1t[:, 5:6] * is_timelike
          + be1t_ref[...])
    he = jnp.maximum(he, 0.0)                    # (Dep, TE)

    # Edge-predictor layer 2: (d_ep -> 1) contraction on the VPU as well.
    logit = (jnp.sum(we2_ref[...] * he, axis=0, keepdims=True)
             + be2_ref[...])                     # (1, TE)
    out_ref[...] = jax.nn.sigmoid(logit)         # lane-dense (1, TE) store


def run_edge_predictor(xembt, src2d, dst2d, phi_params, ep_params, *, tile_e):
    h, n_pad = xembt.shape
    e_pad = src2d.shape[1]
    w1t, b1t, w2, b2 = phi_params
    we1t, be1t, we2, be2 = ep_params
    d_phi = w1t.shape[0]
    d_ep = we1t.shape[0]

    def full(shape):
        return pl.BlockSpec(shape, lambda i: (0, 0))

    return pl.pallas_call(
        edge_kernel,
        out_shape=jax.ShapeDtypeStruct((1, e_pad), jnp.float32),
        grid_spec=pltpu.PrefetchScalarGridSpec(
            num_scalar_prefetch=0,
            grid=(e_pad // tile_e,),
            in_specs=[
                full((h, n_pad)),                                  # x_emb^T (resident)
                pl.BlockSpec((1, tile_e), lambda i: (0, i)),       # src ids
                pl.BlockSpec((1, tile_e), lambda i: (0, i)),       # dst ids
                full((d_phi, h)), full((d_phi, 1)),                # phi layer 1
                full((d_phi, 1)), full((1, 1)),                    # phi layer 2
                full((d_ep, 6)), full((d_ep, 1)),                  # pred layer 1
                full((d_ep, 1)), full((1, 1)),                     # pred layer 2
            ],
            out_specs=pl.BlockSpec((1, tile_e), lambda i: (0, i)),
        ),
        compiler_params=pltpu.CompilerParams(
            dimension_semantics=("parallel",)),
    )(xembt, src2d, dst2d, w1t, b1t, w2, b2, we1t, be1t, we2, be2)


# ----------------------------------------------------------------------------
# Full forward (wrapper): sparse aggregation + padding/transposes in glue,
# hot paths in Pallas.
# ----------------------------------------------------------------------------
def gravity_causal_forward(x, edge_index, params, *, tile_n=512, tile_e=512):
    n, d_in = x.shape
    h = params["gnn_w_self"].shape[1]
    assert h >= 3, "embedding dim must be >= 3 (dt, dx, dy channels)"
    src = edge_index[0].astype(jnp.int32)
    dst = edge_index[1].astype(jnp.int32)
    e = src.shape[0]

    # Sparse message aggregation: sum over edges s->d of x[s] at node d.
    # O(E*Din) instead of the old dense (N,N) adjacency matmul.
    agg = jnp.zeros((n, d_in), jnp.float32).at[dst].add(x[src])

    # Pad node axis to a lane multiple; transposed (feature, node) layout so
    # the GNN output store is lane-dense.
    n_pad = _round_up(max(n, 128), 128)
    tn = min(tile_n, n_pad)
    n_pad = _round_up(n_pad, tn)
    xt = jnp.zeros((d_in, n_pad), jnp.float32).at[:, :n].set(x.T)
    aggt = jnp.zeros((d_in, n_pad), jnp.float32).at[:, :n].set(agg.T)

    x_emb_t = run_gnn(xt, aggt,
                      params["gnn_w_self"].T, params["gnn_w_nbr"].T,
                      params["gnn_b"].T, tile_n=tn)          # (H, N_pad)

    # Pad edge axis; endpoint indices go straight into the kernel (fused gather).
    e_pad = _round_up(max(e, 128), 128)
    te = min(tile_e, e_pad)
    e_pad = _round_up(e_pad, te)
    src2d = jnp.zeros((1, e_pad), jnp.int32).at[0, :e].set(src)
    dst2d = jnp.zeros((1, e_pad), jnp.int32).at[0, :e].set(dst)

    probs = run_edge_predictor(
        x_emb_t, src2d, dst2d,
        (params["phi_w1"].T, params["phi_b1"].T,
         params["phi_w2"], params["phi_b2"]),
        (params["ep_w1"].T, params["ep_b1"].T,
         params["ep_w2"], params["ep_b2"]),
        tile_e=te)
    return probs[0, :e]                                       # (E,)


def make_params(key, d_in, d_hid, d_phi, d_ep):
    ks = jax.random.split(key, 8)
    s = 0.2
    return {
        "gnn_w_self": s * jax.random.normal(ks[0], (d_in, d_hid), jnp.float32),
        "gnn_w_nbr":  s * jax.random.normal(ks[1], (d_in, d_hid), jnp.float32),
        "gnn_b":      s * jax.random.normal(ks[2], (1, d_hid), jnp.float32),
        "phi_w1":     s * jax.random.normal(ks[3], (d_hid, d_phi), jnp.float32),
        "phi_b1":     jnp.zeros((1, d_phi), jnp.float32),
        "phi_w2":     s * jax.random.normal(ks[4], (d_phi, 1), jnp.float32),
        "phi_b2":     jnp.zeros((1, 1), jnp.float32),
        "ep_w1":      s * jax.random.normal(ks[5], (6, d_ep), jnp.float32),
        "ep_b1":      jnp.zeros((1, d_ep), jnp.float32),
        "ep_w2":      s * jax.random.normal(ks[6], (d_ep, 1), jnp.float32),
        "ep_b2":      jnp.zeros((1, 1), jnp.float32),
    }


# Pure-JAX reference (mirrors the PyTorch wrapper's per-edge loop, vectorized).
def reference_forward(x, edge_index, params):
    hi = jax.lax.Precision.HIGHEST
    src, dst = edge_index[0], edge_index[1]
    agg = jnp.zeros_like(x).at[dst].add(x[src])
    x_emb = jnp.tanh(jnp.dot(x, params["gnn_w_self"], precision=hi)
                     + jnp.dot(agg, params["gnn_w_nbr"], precision=hi)
                     + params["gnn_b"])
    ei, ej = x_emb[src], x_emb[dst]
    delta = ej - ei
    dt, dx, dy = delta[:, 0], delta[:, 1], delta[:, 2]
    dx2 = dx ** 2 + dy ** 2
    dt2 = dt ** 2
    hphi = jax.nn.relu(jnp.dot(ei, params["phi_w1"], precision=hi)
                       + params["phi_b1"])
    phi = (jnp.dot(hphi, params["phi_w2"], precision=hi) + params["phi_b2"])[:, 0]
    ds2 = -phi * dt2 + dx2
    sdist = jnp.sqrt(dx2)
    tl = (ds2 < 0).astype(jnp.float32)
    feats = jnp.stack([dx, dy, dt, ds2, sdist, tl], axis=1)
    he = jax.nn.relu(jnp.dot(feats, params["ep_w1"], precision=hi)
                     + params["ep_b1"])
    logit = (jnp.dot(he, params["ep_w2"], precision=hi) + params["ep_b2"])[:, 0]
    return jax.nn.sigmoid(logit)


if __name__ == "__main__":
    NUM_NODES, D_IN, D_HID, D_PHI, D_EP, NUM_EDGES = 16, 4, 8, 16, 16, 8

    key = jax.random.PRNGKey(0)
    k_x, k_e, k_p = jax.random.split(key, 3)

    x = jax.random.normal(k_x, (NUM_NODES, D_IN), jnp.float32)
    edge_index = jax.random.randint(k_e, (2, NUM_EDGES), 0, NUM_NODES,
                                    dtype=jnp.int32)
    params = make_params(k_p, D_IN, D_HID, D_PHI, D_EP)

    edge_probs = gravity_causal_forward(x, edge_index, params)
    jax.block_until_ready(edge_probs)

    assert edge_probs.shape == (NUM_EDGES,)
    assert bool(jnp.all(jnp.isfinite(edge_probs)))

    ref = reference_forward(x, edge_index, params)
    assert bool(jnp.allclose(edge_probs, ref, atol=1e-3, rtol=1e-3)), (
        edge_probs, ref)
    print("KERNEL_OK")
</pallas_src>

<mosaic_0001>
module attributes {stable_mosaic.version = 11 : i64} {
  func.func @gnn_kernel(%arg0: i32, %arg1: memref<4x128xf32, #tpu.memory_space<vmem>>, %arg2: memref<4x128xf32, #tpu.memory_space<vmem>>, %arg3: memref<8x4xf32, #tpu.memory_space<vmem>>, %arg4: memref<8x4xf32, #tpu.memory_space<vmem>>, %arg5: memref<8x1xf32, #tpu.memory_space<vmem>>, %arg6: memref<8x128xf32, #tpu.memory_space<vmem>>) attributes {dimension_semantics = [#tpu.dimension_semantics<parallel>], iteration_bounds = array<i64: 1>, scalar_prefetch = 0 : i64, scratch_operands = 0 : i64, tpu.core_type = #tpu.core_type<tc>, window_params = [{transform_indices = @transform_0, window_bounds = array<i64: 4, 128>}, {transform_indices = @transform_1, window_bounds = array<i64: 4, 128>}, {pipeline_mode = #tpu.pipeline_mode<synchronous>, transform_indices = @transform_2, window_bounds = array<i64: 8, 4>}, {pipeline_mode = #tpu.pipeline_mode<synchronous>, transform_indices = @transform_3, window_bounds = array<i64: 8, 4>}, {pipeline_mode = #tpu.pipeline_mode<synchronous>, transform_indices = @transform_4, window_bounds = array<i64: 8, 1>}, {transform_indices = @transform_5, window_bounds = array<i64: 8, 128>}]} {
    %c0 = arith.constant 0 : index
    %c0_0 = arith.constant 0 : index
    %0 = vector.load %arg3[%c0, %c0_0] : memref<8x4xf32, #tpu.memory_space<vmem>>, vector<8x4xf32>
    %c0_1 = arith.constant 0 : index
    %c0_2 = arith.constant 0 : index
    %1 = vector.load %arg1[%c0_1, %c0_2] : memref<4x128xf32, #tpu.memory_space<vmem>>, vector<4x128xf32>
    %cst = arith.constant dense<0.000000e+00> : vector<8x128xf32>
    %2 = tpu.matmul %0, %1, %cst {dimension_numbers = #tpu.dot_dimension_numbers<[1], [0], [0], [1], [0, 0, 1, 1], [], []>} : vector<8x4xf32>, vector<4x128xf32>, vector<8x128xf32> -> vector<8x128xf32>
    %c0_3 = arith.constant 0 : index
    %c0_4 = arith.constant 0 : index
    %3 = vector.load %arg4[%c0_3, %c0_4] : memref<8x4xf32, #tpu.memory_space<vmem>>, vector<8x4xf32>
    %c0_5 = arith.constant 0 : index
    %c0_6 = arith.constant 0 : index
    %4 = vector.load %arg2[%c0_5, %c0_6] : memref<4x128xf32, #tpu.memory_space<vmem>>, vector<4x128xf32>
    %cst_7 = arith.constant dense<0.000000e+00> : vector<8x128xf32>
    %5 = tpu.matmul %3, %4, %cst_7 {dimension_numbers = #tpu.dot_dimension_numbers<[1], [0], [0], [1], [0, 0, 1, 1], [], []>} : vector<8x4xf32>, vector<4x128xf32>, vector<8x128xf32> -> vector<8x128xf32>
    %6 = arith.addf %2, %5 : vector<8x128xf32>
    %c0_8 = arith.constant 0 : index
    %c0_9 = arith.constant 0 : index
    %7 = vector.load %arg5[%c0_8, %c0_9] : memref<8x1xf32, #tpu.memory_space<vmem>>, vector<8x1xf32>
    %8 = vector.broadcast %7 : vector<8x1xf32> to vector<8x128xf32>
    %9 = arith.addf %6, %8 : vector<8x128xf32>
    %10 = math.tanh %9 : vector<8x128xf32>
    %c0_10 = arith.constant 0 : index
    %c0_11 = arith.constant 0 : index
    %11 = vector.load %arg6[%c0_10, %c0_11] : memref<8x128xf32, #tpu.memory_space<vmem>>, vector<8x128xf32>
    tpu.vector_store %arg6[%c0_10, %c0_11], %10 {strides = array<i32>} : memref<8x128xf32, #tpu.memory_space<vmem>>, vector<8x128xf32>,
    return
  }
  func.func @transform_0(%arg0: i32) -> (i32, i32) {
    %c0_i32 = arith.constant 0 : i32
    %c0_i32_0 = arith.constant 0 : i32
    return %c0_i32, %arg0 : i32, i32
  }
  func.func @transform_1(%arg0: i32) -> (i32, i32) {
    %c0_i32 = arith.constant 0 : i32
    %c0_i32_0 = arith.constant 0 : i32
    return %c0_i32, %arg0 : i32, i32
  }
  func.func @transform_2(%arg0: i32) -> (i32, i32) {
    %c0_i32 = arith.constant 0 : i32
    %c0_i32_0 = arith.constant 0 : i32
    %c0_i32_1 = arith.constant 0 : i32
    return %c0_i32, %c0_i32_0 : i32, i32
  }
  func.func @transform_3(%arg0: i32) -> (i32, i32) {
    %c0_i32 = arith.constant 0 : i32
    %c0_i32_0 = arith.constant 0 : i32
    %c0_i32_1 = arith.constant 0 : i32
    return %c0_i32, %c0_i32_0 : i32, i32
  }
  func.func @transform_4(%arg0: i32) -> (i32, i32) {
    %c0_i32 = arith.constant 0 : i32
    %c0_i32_0 = arith.constant 0 : i32
    %c0_i32_1 = arith.constant 0 : i32
    return %c0_i32, %c0_i32_0 : i32, i32
  }
  func.func @transform_5(%arg0: i32) -> (i32, i32) {
    %c0_i32 = arith.constant 0 : i32
    %c0_i32_0 = arith.constant 0 : i32
    return %c0_i32, %arg0 : i32, i32
  }
}

</mosaic_0001>

<bundles_post_ra>
// kernel: tpu_custom_call.1
= control target key start
LH: loop header
LB: loop body
LE: loop exit
PB: predicated region body
PF: predicated region fallthrough
CT: control target
= control target key end

     0   :  { %vm29_vm0 = vcmask 1043456   ;;  %vm25_vm1 = vcmask 31744   ;;  %s189_s0 = inlined_call_operand.vmem [shape: f32[4,128], index: 0, kind: input, shape index: {}]   ;;  %s190_s1 = inlined_call_operand.vmem [shape: f32[4,128], index: 1, kind: input, shape index: {}]   ;;  %s191_s2 = inlined_call_operand.vmem [shape: f32[8,4], index: 2, kind: input, shape index: {}]   ;;  %s192_s3 = inlined_call_operand.vmem [shape: f32[8,4], index: 3, kind: input, shape index: {}]   ;;  %s193_s4 = inlined_call_operand.vmem [shape: f32[8,1], index: 4, kind: input, shape index: {}]   ;;  %s194_s5 = inlined_call_operand.hbm [shape: f32[8,128], index: 5, kind: output, shape index: {}]  }
   0x1   :  { %v24_v0 = vld [vmem:[%s190_s1] sm:$0xf] }
   0x2   :  { %v22_v1 = vld [vmem:[%s189_s0] sm:$0xf]  ;;  %104 = vmatpush.msk.msra.mxu0 %vm29_vm0, %v24_v0 }
   0x3   :  { %v23_v2 = vld [vmem:[%s192_s3] sm:$0xff]  ;;  %106 = vmatpush.msk.msra.mxu1 %vm29_vm0, %v22_v1 }
   0x4   :  { %v21_v3 = vld [vmem:[%s191_s2] sm:$0xff] }
   0x5   :  { %v79_v4 = vld [vmem:[%s193_s4] sm:$0xff] }
   0x6   :  { %10 = vsyncpa [#allocation3], 0  ;;  %105 = vmatmul.msk.f32.vlgmr.msra.gmra.mxu0 %vm25_vm1, %v23_v2  ;;  %107 = vmatmul.msk.f32.vlgmr.msra.gmra.mxu1 %vm25_vm1, %v21_v3  ;;  %v139_v5 = vmov 0   ;;  %s140_s0 = smov [#allocation2]   ;;  %s95_s28 = sshll.u32 %s194_s5, 4  ;;  %s96_s28 = int_to_ptr.hbm [resolvable:$true] %s95_s28 }
   0x7   :  { %110 = vset.pattern.permute.xlu0 %v139_v5  ;;  %s93_s1 = sshll.u32 %s140_s0, 4  ;;  %s94_s1 = int_to_ptr.vmem [resolvable:$true] %s93_s1 }
   0x8   :  { %82 = vperm.xlu0 %110, %v79_v4  }
  0x7a   :  { %v83_v6 = vpop.permute.xlu0 %82 }
  0x83   :  { %v50_v7 = vpop.f32.mrf.mxu0  ;;  %v76_v8 = vpop.f32.mrf.mxu1 }
  0x84   :  { %v77_v9 = vadd.f32 %v76_v8, %v50_v7 }
  0x86   :  { %v85_v10 = vadd.f32 %v83_v6, %v77_v9 }
  0x88   :  { %111 = vtanh.f32 %v85_v10 }
  0x8e   :  { %v112_v11 = vpop.eup %111 }
  0x8f   :  { %87 = vst [vmem:[#allocation2] sm:$0xff] %v112_v11 }
  0x90   :  { %98 = dma.vmem_to_hbm [thread:$0]  %s94_s1, 128, %s96_s28, [#allocation3]  }
  0x91   :  { %137 = dma.done.wait [#allocation3], 128  }
  0x92   :  { %138 = vsyncadd [#allocation3], 4294967168 }
  0x93   :  { %103 = vsyncpa [#allocation3], 1 }

</bundles_post_ra>
